<compile_context>
chip_gen: v7x
topology: tpu7x:2x2x1
jax: 0.10.0
libtpu: 0.0.40
codegen_flags: <defaults>
</compile_context>

<pallas_src>
import functools

import jax
import jax.numpy as jnp
from jax import lax
from jax.experimental import pallas as pl
from jax.experimental.pallas import tpu as pltpu

_BN_EPS = 1e-5


def _round_up(x, m):
    return ((x + m - 1) // m) * m


def _pick_h_tile(h, w, cout):
    """Largest H tile (multiple of 128) that fits a conservative VMEM budget."""
    # Pass-2 VMEM per step: double-buffered x tile (2W x th) + output tile (C_out x th), f32.
    budget = 12 * 1024 * 1024          # stays under v5e's 16 MiB scoped default
    cap = budget // (8 * (2 * w + cout))
    cap = max(128, (cap // 128) * 128)
    cap = min(cap, 8192)
    # Prefer an exact divisor of h (no padding); otherwise cap + pad.
    for cand in (8192, 4096, 2048, 1024, 512, 256, 128):
        if cand <= cap and h % cand == 0:
            return cand
    return min(cap, _round_up(h, 128))


def _stats_kernel(x_ref, w_ref, sum_ref, sumsq_ref):
    """Pass 1: per-batch partial sum / sum-of-squares of the conv output."""

    @pl.when(pl.program_id(1) == 0)
    def _():
        sum_ref[...] = jnp.zeros_like(sum_ref)
        sumsq_ref[...] = jnp.zeros_like(sumsq_ref)

    # (C_out, 2W) x (2W, TH) -> (C_out, TH), lane-dense on H.
    y = jnp.dot(w_ref[...], x_ref[0], preferred_element_type=jnp.float32)
    sum_ref[...] += jnp.sum(y, axis=1, keepdims=True)[None]
    sumsq_ref[...] += jnp.sum(y * y, axis=1, keepdims=True)[None]


def _apply_kernel(x_ref, w_ref, scale_ref, bias_ref, o_ref, *, non_lin):
    """Pass 2: recompute conv tile, apply folded BN scale/bias + nonlinearity."""
    y = jnp.dot(w_ref[...], x_ref[0], preferred_element_type=jnp.float32)  # (C_out, TH)
    z = y * scale_ref[...] + bias_ref[...]                                 # one FMA/elem

    if non_lin == "ReLU":
        z = jnp.maximum(z, 0.0)
    elif non_lin == "LeakyReLU":
        z = jnp.where(z >= 0.0, z, 0.01 * z)      # PyTorch default negative slope
    elif non_lin == "tanh":
        z = jnp.tanh(z)
    else:
        raise ValueError(f"unknown non_lin {non_lin}")

    o_ref[0] = z                                   # (C_out, TH)


def width_reduction(x_nchw, conv_weight, gamma, beta, non_lin="ReLU"):
    """x_nchw: (N, 2, H, W) f32; conv_weight: (C_out, 2, 1, in_width) f32.

    Returns (N, C_out, H, 1) f32 == NonLin(BatchNorm(Conv(x))).
    """
    n, cin, h, w = x_nchw.shape
    cout, cin_w, kh, kw = conv_weight.shape
    assert cin == 2 and cin_w == 2 and kh == 1
    # TODO(synk): the general sliding-window case (input width > in_width, W_out > 1)
    # is not implemented; Width_Reduction always consumes the full width.
    assert kw == w, "kernel width must equal input width (width reduction)"

    th = _pick_h_tile(h, w, cout)
    h_pad = _round_up(h, th)
    grid = (n, h_pad // th)

    # One-time layout change: H on lanes, fused (channel, width) on sublanes.
    # Zero-padded H columns give zero conv outputs -> no effect on the statistics.
    x_t = jnp.transpose(x_nchw, (0, 1, 3, 2)).reshape(n, 2 * w, h)
    if h_pad != h:
        x_t = jnp.pad(x_t, ((0, 0), (0, 0), (0, h_pad - h)))

    w_flat = conv_weight.reshape(cout, 2 * kw).astype(jnp.float32)

    x_spec = pl.BlockSpec((1, 2 * w, th), lambda i, j: (i, 0, j))
    w_spec = pl.BlockSpec((cout, 2 * w), lambda i, j: (0, 0))
    col_spec = pl.BlockSpec((cout, 1), lambda i, j: (0, 0))
    part_spec = pl.BlockSpec((1, cout, 1), lambda i, j: (i, 0, 0))

    # ---- Pass 1: per-batch partial statistics (batch axis parallel) ----
    sum_b, sumsq_b = pl.pallas_call(
        _stats_kernel,
        grid=grid,
        in_specs=[x_spec, w_spec],
        out_specs=(part_spec, part_spec),
        out_shape=(jax.ShapeDtypeStruct((n, cout, 1), jnp.float32),
                   jax.ShapeDtypeStruct((n, cout, 1), jnp.float32)),
        compiler_params=pltpu.CompilerParams(
            dimension_semantics=("parallel", "arbitrary")),
    )(x_t, w_flat)

    # ---- Fold BatchNorm (batch stats, biased var) into per-channel scale/bias ----
    count = float(n * h)                                     # W_out == 1
    total = jnp.sum(sum_b, axis=0)                           # (C_out, 1)
    total_sq = jnp.sum(sumsq_b, axis=0)                      # (C_out, 1)
    mean = total / count
    var = jnp.maximum(total_sq / count - mean * mean, 0.0)   # clamp cancellation residue
    scale = gamma.reshape(cout, 1).astype(jnp.float32) * lax.rsqrt(var + _BN_EPS)
    bias = beta.reshape(cout, 1).astype(jnp.float32) - mean * scale

    # ---- Pass 2: conv + folded BN + nonlin, fully parallel over the grid ----
    kernel = functools.partial(_apply_kernel, non_lin=non_lin)
    out = pl.pallas_call(
        kernel,
        grid=grid,
        in_specs=[x_spec, w_spec, col_spec, col_spec],
        out_specs=pl.BlockSpec((1, cout, th), lambda i, j: (i, 0, j)),
        out_shape=jax.ShapeDtypeStruct((n, cout, h_pad), jnp.float32),
        compiler_params=pltpu.CompilerParams(
            dimension_semantics=("parallel", "parallel")),
    )(x_t, w_flat, scale, bias)

    # Drop H padding; (N, C_out, H) -> (N, C_out, H, 1) is NCHW with W_out == 1.
    return out[:, :, :h].reshape(n, cout, h, 1)


def _reference(x_nchw, conv_weight, gamma, beta, non_lin="ReLU"):
    """Pure-JAX reference of the PyTorch forward pass."""
    cout, _, _, kw = conv_weight.shape
    w_mat = conv_weight.reshape(cout, 2, kw)
    y = jnp.einsum("nchk,ock->noh", x_nchw, w_mat)[..., None]   # (N, C_out, H, 1)
    mean = jnp.mean(y, axis=(0, 2, 3), keepdims=True)
    var = jnp.mean((y - mean) ** 2, axis=(0, 2, 3), keepdims=True)
    y = (y - mean) * lax.rsqrt(var + _BN_EPS)
    y = y * gamma.reshape(1, -1, 1, 1) + beta.reshape(1, -1, 1, 1)
    if non_lin == "ReLU":
        y = jnp.maximum(y, 0.0)
    elif non_lin == "LeakyReLU":
        y = jnp.where(y >= 0.0, y, 0.01 * y)
    else:
        y = jnp.tanh(y)
    return y


if __name__ == "__main__":
    key = jax.random.PRNGKey(0)
    k_x, k_w, k_g, k_b = jax.random.split(key, 4)

    N, H, IN_W, C_OUT = 2, 16, 8, 32        # in_channels fixed to 2 by the module
    x = jax.random.normal(k_x, (N, 2, H, IN_W), dtype=jnp.float32)

    # Deterministic parameter init (Conv2d kaiming-uniform-like bound, BN affine).
    fan_in = 2 * 1 * IN_W
    bound = 1.0 / (fan_in ** 0.5)
    conv_weight = jax.random.uniform(k_w, (C_OUT, 2, 1, IN_W), dtype=jnp.float32,
                                     minval=-bound, maxval=bound)
    gamma = jax.random.uniform(k_g, (C_OUT,), dtype=jnp.float32, minval=0.5, maxval=1.5)
    beta = jax.random.uniform(k_b, (C_OUT,), dtype=jnp.float32, minval=-0.5, maxval=0.5)

    out = width_reduction(x, conv_weight, gamma, beta, non_lin="ReLU")
    out = jax.block_until_ready(out)

    ref = _reference(x, conv_weight, gamma, beta, non_lin="ReLU")
    assert out.shape == (N, C_OUT, H, 1)
    assert jnp.max(jnp.abs(out - ref)) < 5e-4, "mismatch vs reference"

    print("KERNEL_OK")
</pallas_src>

<mosaic_0001>
module attributes {stable_mosaic.version = 11 : i64} {
  func.func @_stats_kernel(%arg0: i32, %arg1: i32, %arg2: memref<1x16x128xf32, #tpu.memory_space<vmem>>, %arg3: memref<32x16xf32, #tpu.memory_space<vmem>>, %arg4: memref<1x32x1xf32, #tpu.memory_space<vmem>>, %arg5: memref<1x32x1xf32, #tpu.memory_space<vmem>>) attributes {dimension_semantics = [#tpu.dimension_semantics<parallel>, #tpu.dimension_semantics<arbitrary>], iteration_bounds = array<i64: 2, 1>, scalar_prefetch = 0 : i64, scratch_operands = 0 : i64, tpu.core_type = #tpu.core_type<tc>, window_params = [{transform_indices = @transform_0, window_bounds = array<i64: 1, 16, 128>}, {pipeline_mode = #tpu.pipeline_mode<synchronous>, transform_indices = @transform_1, window_bounds = array<i64: 32, 16>}, {transform_indices = @transform_2, window_bounds = array<i64: 1, 32, 1>}, {transform_indices = @transform_3, window_bounds = array<i64: 1, 32, 1>}]} {
    %c0_i32 = arith.constant 0 : i32
    %0 = arith.cmpi eq, %arg1, %c0_i32 : i32
    %1 = arith.extui %0 : i1 to i32
    %c0_i32_0 = arith.constant 0 : i32
    %2 = arith.cmpi ne, %1, %c0_i32_0 : i32
    scf.if %2 {
      %cst_19 = arith.constant 0.000000e+00 : f32
      %20 = vector.broadcast %cst_19 : f32 to vector<1x32x1xf32>
      %c0_20 = arith.constant 0 : index
      %c0_21 = arith.constant 0 : index
      %c0_22 = arith.constant 0 : index
      %21 = vector.load %arg4[%c0_20, %c0_21, %c0_22] : memref<1x32x1xf32, #tpu.memory_space<vmem>>, vector<1x32x1xf32>
      tpu.vector_store %arg4[%c0_20, %c0_21, %c0_22], %20 {strides = array<i32>} : memref<1x32x1xf32, #tpu.memory_space<vmem>>, vector<1x32x1xf32>,
      %cst_23 = arith.constant 0.000000e+00 : f32
      %22 = vector.broadcast %cst_23 : f32 to vector<1x32x1xf32>
      %c0_24 = arith.constant 0 : index
      %c0_25 = arith.constant 0 : index
      %c0_26 = arith.constant 0 : index
      %23 = vector.load %arg5[%c0_24, %c0_25, %c0_26] : memref<1x32x1xf32, #tpu.memory_space<vmem>>, vector<1x32x1xf32>
      tpu.vector_store %arg5[%c0_24, %c0_25, %c0_26], %22 {strides = array<i32>} : memref<1x32x1xf32, #tpu.memory_space<vmem>>, vector<1x32x1xf32>,
    } else {
    }
    %c0 = arith.constant 0 : index
    %c0_1 = arith.constant 0 : index
    %3 = vector.load %arg3[%c0, %c0_1] : memref<32x16xf32, #tpu.memory_space<vmem>>, vector<32x16xf32>
    %c0_2 = arith.constant 0 : index
    %c0_3 = arith.constant 0 : index
    %c0_4 = arith.constant 0 : index
    %4 = vector.load %arg2[%c0_2, %c0_3, %c0_4] : memref<1x16x128xf32, #tpu.memory_space<vmem>>, vector<1x16x128xf32>
    %5 = vector.shape_cast %4 : vector<1x16x128xf32> to vector<16x128xf32>
    %cst = arith.constant dense<0.000000e+00> : vector<32x128xf32>
    %6 = tpu.matmul %3, %5, %cst {dimension_numbers = #tpu.dot_dimension_numbers<[1], [0], [0], [1], [0, 0, 1, 1], [], []>} : vector<32x16xf32>, vector<16x128xf32>, vector<32x128xf32> -> vector<32x128xf32>
    %c0_5 = arith.constant 0 : index
    %c0_6 = arith.constant 0 : index
    %c0_7 = arith.constant 0 : index
    %7 = vector.load %arg4[%c0_5, %c0_6, %c0_7] : memref<1x32x1xf32, #tpu.memory_space<vmem>>, vector<1x32x1xf32>
    %cst_8 = arith.constant dense<0.000000e+00> : vector<32xf32>
    %8 = vector.multi_reduction <add>, %6, %cst_8 [1] : vector<32x128xf32> to vector<32xf32>
    %9 = vector.shape_cast %8 : vector<32xf32> to vector<32x1xf32>
    %10 = vector.shape_cast %9 : vector<32x1xf32> to vector<1x32x1xf32>
    %11 = arith.addf %7, %10 : vector<1x32x1xf32>
    %c0_9 = arith.constant 0 : index
    %c0_10 = arith.constant 0 : index
    %c0_11 = arith.constant 0 : index
    %12 = vector.load %arg4[%c0_9, %c0_10, %c0_11] : memref<1x32x1xf32, #tpu.memory_space<vmem>>, vector<1x32x1xf32>
    tpu.vector_store %arg4[%c0_9, %c0_10, %c0_11], %11 {strides = array<i32>} : memref<1x32x1xf32, #tpu.memory_space<vmem>>, vector<1x32x1xf32>,
    %c0_12 = arith.constant 0 : index
    %c0_13 = arith.constant 0 : index
    %c0_14 = arith.constant 0 : index
    %13 = vector.load %arg5[%c0_12, %c0_13, %c0_14] : memref<1x32x1xf32, #tpu.memory_space<vmem>>, vector<1x32x1xf32>
    %14 = arith.mulf %6, %6 : vector<32x128xf32>
    %cst_15 = arith.constant dense<0.000000e+00> : vector<32xf32>
    %15 = vector.multi_reduction <add>, %14, %cst_15 [1] : vector<32x128xf32> to vector<32xf32>
    %16 = vector.shape_cast %15 : vector<32xf32> to vector<32x1xf32>
    %17 = vector.shape_cast %16 : vector<32x1xf32> to vector<1x32x1xf32>
    %18 = arith.addf %13, %17 : vector<1x32x1xf32>
    %c0_16 = arith.constant 0 : index
    %c0_17 = arith.constant 0 : index
    %c0_18 = arith.constant 0 : index
    %19 = vector.load %arg5[%c0_16, %c0_17, %c0_18] : memref<1x32x1xf32, #tpu.memory_space<vmem>>, vector<1x32x1xf32>
    tpu.vector_store %arg5[%c0_16, %c0_17, %c0_18], %18 {strides = array<i32>} : memref<1x32x1xf32, #tpu.memory_space<vmem>>, vector<1x32x1xf32>,
    return
  }
  func.func @transform_0(%arg0: i32, %arg1: i32) -> (i32, i32, i32) {
    %c0_i32 = arith.constant 0 : i32
    %c0_i32_0 = arith.constant 0 : i32
    return %arg0, %c0_i32, %arg1 : i32, i32, i32
  }
  func.func @transform_1(%arg0: i32, %arg1: i32) -> (i32, i32) {
    %c0_i32 = arith.constant 0 : i32
    %c0_i32_0 = arith.constant 0 : i32
    %c0_i32_1 = arith.constant 0 : i32
    return %c0_i32, %c0_i32_0 : i32, i32
  }
  func.func @transform_2(%arg0: i32, %arg1: i32) -> (i32, i32, i32) {
    %c0_i32 = arith.constant 0 : i32
    %c0_i32_0 = arith.constant 0 : i32
    %c0_i32_1 = arith.constant 0 : i32
    return %arg0, %c0_i32, %c0_i32_0 : i32, i32, i32
  }
  func.func @transform_3(%arg0: i32, %arg1: i32) -> (i32, i32, i32) {
    %c0_i32 = arith.constant 0 : i32
    %c0_i32_0 = arith.constant 0 : i32
    %c0_i32_1 = arith.constant 0 : i32
    return %arg0, %c0_i32, %c0_i32_0 : i32, i32, i32
  }
}

</mosaic_0001>

<bundles_post_ra>
// kernel: tpu_custom_call.1
= control target key start
LH: loop header
LB: loop body
LE: loop exit
PB: predicated region body
PF: predicated region fallthrough
CT: control target
= control target key end

     0   :  { %s583_s12 = smov 0   ;;  %s585_s13 = smov 0   ;;  %s679_s0 = inlined_call_operand.vmem [shape: f32[2,16,128], index: 0, kind: input, shape index: {}]   ;;  %s680_s1 = inlined_call_operand.vmem [shape: f32[32,16], index: 1, kind: input, shape index: {}]   ;;  %s681_s2 = inlined_call_operand.vmem [shape: f32[2,32,1], index: 2, kind: output, shape index: {0}]   ;;  %s682_s3 = inlined_call_operand.vmem [shape: f32[2,32,1], index: 3, kind: output, shape index: {1}]  }
   0x1   :  { %s587_s14 = smov 0  }
   0x2 LB: > { %s26_s15 = sadd.s32 1, %s556_s13  ;;  %p475_p0 = scmp.ge.s32.totalorder %s560_s14, 1  ;;  %s560_s14 = sphi %s587_s14, %s14_s14   ;;  %s556_s13 = sphi %s585_s13, %s684_s13   ;;  %s552_s12 = sphi %s583_s12, %s683_s12  }
   0x3   : > { %p28_p1 = scmp.ge.s32.totalorder %s26_s15, 2  ;;  %p157_p2 = scmp.lt.s32.totalorder %s560_s14, 3 }
   0x5   : > { %s686_s15 = smov (%p28_p1, %s26_s15), 0  ;;  %p158_p3 = pnand %p475_p0, %p157_p2 }
   0x6   : > { %p189_p4 = scmp.lt.s32.totalorder (!%p158_p3), %s552_s12, 1  ;;  %v220_v0 = vld [vmem:[%s680_s1] sm:$0xff] (!%p158_p3)  ;;  %vm226_vm0 = vcmask (!%p158_p3), 130048   ;;  %v222_v1 = vld [vmem:[%s680_s1 + $0x10] sm:$0xff] (!%p158_p3)  ;;  %v221_v5 = vld [vmem:[%s680_s1 + $0x8] sm:$0xff] (!%p158_p3)  ;;  %vm211_vm1 = vcmask (!%p158_p3), 7168  }
   0x7   : > { %161 = sbr.rel (%p158_p3) target bundleno = 393 (0x189), region = 28  ;;  %501 = vmatprep.mubr.msk.f32.mxu0 (!%p158_p3), %vm226_vm0, %v220_v0  ;;  %504 = vmatprep.mubr.msk.f32.mxu1 (!%p158_p3), %vm226_vm0, %v222_v1  ;;  %v223_v6 = vld [vmem:[%s680_s1 + $0x18] sm:$0xff] (!%p158_p3)  ;;  %v562_v7 = vmov (!%p158_p3), 0.0  }
   0xe   : > { %s688_s12 = smov (!%p189_p4, %s552_s12), 1 }
   0xf   : > { %s488_s20 = sshll.u32 %s688_s12, 4  ;;  %s489_s28 = sshll.u32 %s688_s12, 5 }
  0x10   : > { %s196_s23 = scalar_lea.vmem %s679_s0, %s488_s20  ;;  %s623_s4 = scalar_lea.vmem %s681_s2, %s489_s28 }
  0x11   : > { %v224_v2 = vld [vmem:[%s196_s23] sm:$0xff]  ;;  %v225_v3 = vld [vmem:[%s196_s23 + $0x8] sm:$0xff]  ;;  %s628_s7 = scalar_lea.vmem %s682_s3, %s489_s28  ;;  %215 = vst.msk [vmem:[%s623_s4 + $0x18] sm:$0xff] %vm211_vm1, %v562_v7  ;;  %212 = vst.msk [vmem:[%s623_s4] sm:$0xff] %vm211_vm1, %v562_v7 }
  0x12   : > { %v507_v4 = vpack.c.bf16 %v225_v3, %v224_v2  ;;  %213 = vst.msk [vmem:[%s623_s4 + $0x8] sm:$0xff] %vm211_vm1, %v562_v7  ;;  %214 = vst.msk [vmem:[%s623_s4 + $0x10] sm:$0xff] %vm211_vm1, %v562_v7 }
  0x13   : > { %216 = vst.msk [vmem:[%s628_s7] sm:$0xff] %vm211_vm1, %v562_v7  ;;  %217 = vst.msk [vmem:[%s628_s7 + $0x8] sm:$0xff] %vm211_vm1, %v562_v7 }
  0x14   : > { %508 = vmatprep.subr.bf16.mxu0 %v507_v4  ;;  %511 = vmatprep.subr.bf16.mxu1 %v507_v4  ;;  %218 = vst.msk [vmem:[%s628_s7 + $0x10] sm:$0xff] %vm211_vm1, %v562_v7  ;;  %219 = vst.msk [vmem:[%s628_s7 + $0x18] sm:$0xff] %vm211_vm1, %v562_v7 }
  0x15   : > { %510 = vmatpush3.bf16.msra.mxu0 %v507_v4  ;;  %512 = vmatpush3.bf16.msra.mxu1 %v507_v4 }
  0x18   : > { %502 = vmatmul.mubr.msk.f32.vlgmr.msra.gmra.mrb[0].mxu0 %vm226_vm0, %v221_v5  ;;  %505 = vmatmul.mubr.msk.f32.vlgmr.msra.gmra.mrb[0].mxu1 %vm226_vm0, %v223_v6  ;;  %v327_v16 = vld [vmem:[%s623_s4 + $0x18] sm:$0xff]  ;;  %v324_v23 = vld [vmem:[%s623_s4] sm:$0xff] }
  0x19   : > { %v325_v17 = vld [vmem:[%s623_s4 + $0x8] sm:$0xff]  ;;  %v326_v22 = vld [vmem:[%s623_s4 + $0x10] sm:$0xff] }
  0x1a   : > { %v346_v28 = vld [vmem:[%s628_s7 + $0x8] sm:$0xff]  ;;  %v345_v29 = vld [vmem:[%s628_s7] sm:$0xff] }
  0x1b   : > { %v348_v34 = vld [vmem:[%s628_s7 + $0x18] sm:$0xff]  ;;  %v347_v35 = vld [vmem:[%s628_s7 + $0x10] sm:$0xff] }
  0xeb   : > { %v503_v8 = vpop.f32.mrb[0].mxu0  ;;  %v506_v9 = vpop.f32.mrb[0].mxu1 }
  0xec   : > { %334 = vadd.xlane.f32.xlu1 %v506_v9  ;;  %v315_v10 = vpop.f32.mrb[1].mxu1  ;;  %330 = vadd.xlane.f32.xlu0 %v503_v8  ;;  %v305_v11 = vpop.f32.mrb[1].mxu0  ;;  %v350_v13 = vmul.f32 %v503_v8, %v503_v8  ;;  %v352_v15 = vmul.f32 %v506_v9, %v506_v9 }
  0xed   : > { %v349_v12 = vmul.f32 %v305_v11, %v305_v11  ;;  %v351_v14 = vmul.f32 %v315_v10, %v315_v10 }
  0xf0   : > { %332 = vadd.xlane.f32.xlu1 %v315_v10  ;;  %328 = vadd.xlane.f32.xlu0 %v305_v11 }
  0xf4   : > { %355 = vadd.xlane.f32.xlu1 %v350_v13  ;;  %353 = vadd.xlane.f32.xlu0 %v349_v12 }
  0xf8   : > { %359 = vadd.xlane.f32.xlu1 %v352_v15  ;;  %357 = vadd.xlane.f32.xlu0 %v351_v14 }
 0x179   : > { %v335_v18 = vpop.xlane.xlu1 %334  ;;  %v331_v19 = vpop.xlane.xlu0 %330 }
 0x17a   : > { %v339_v20 = vadd.f32 %v335_v18, %v327_v16  ;;  %v337_v21 = vadd.f32 %v331_v19, %v325_v17 }
 0x17c   : > { %344 = vst.msk [vmem:[%s623_s4 + $0x18] sm:$0xff] %vm211_vm1, %v339_v20  ;;  %342 = vst.msk [vmem:[%s623_s4 + $0x8] sm:$0xff] %vm211_vm1, %v337_v21 }
 0x17d   : > { %v333_v24 = vpop.xlane.xlu1 %332  ;;  %v329_v25 = vpop.xlane.xlu0 %328 }
 0x17e   : > { %v338_v26 = vadd.f32 %v333_v24, %v326_v22  ;;  %v336_v27 = vadd.f32 %v329_v25, %v324_v23 }
 0x180   : > { %343 = vst.msk [vmem:[%s623_s4 + $0x10] sm:$0xff] %vm211_vm1, %v338_v26  ;;  %341 = vst.msk [vmem:[%s623_s4] sm:$0xff] %vm211_vm1, %v336_v27 }
 0x181   : > { %v356_v30 = vpop.xlane.xlu1 %355  ;;  %v354_v31 = vpop.xlane.xlu0 %353 }
 0x182   : > { %v362_v32 = vadd.f32 %v356_v30, %v346_v28  ;;  %v361_v33 = vadd.f32 %v354_v31, %v345_v29 }
 0x184   : > { %366 = vst.msk [vmem:[%s628_s7 + $0x8] sm:$0xff] %vm211_vm1, %v362_v32  ;;  %365 = vst.msk [vmem:[%s628_s7] sm:$0xff] %vm211_vm1, %v361_v33 }
 0x185   : > { %v360_v36 = vpop.xlane.xlu1 %359  ;;  %v358_v37 = vpop.xlane.xlu0 %357 }
 0x186   : > { %v364_v38 = vadd.f32 %v360_v36, %v348_v34  ;;  %v363_v39 = vadd.f32 %v358_v37, %v347_v35 }
 0x188   : > { %368 = vst.msk [vmem:[%s628_s7 + $0x18] sm:$0xff] %vm211_vm1, %v364_v38  ;;  %367 = vst.msk [vmem:[%s628_s7 + $0x10] sm:$0xff] %vm211_vm1, %v363_v39 }
 0x189 PF: > { %s14_s14 = sadd.s32 1, %s560_s14   ;;  %s683_s12 = smov %s556_s13 }
 0x18a   : > { %p11_p5 = scmp.ge.s32.totalorder %s14_s14, 4   ;;  %s684_s13 = smov %s686_s15 }
 0x18c   :  { %13 = sbr.rel (!%p11_p5) target bundleno = 2 (0x2), region = 74 }

</bundles_post_ra>
